<compile_context>
chip_gen: v7x
topology: tpu7x:2x2x1
jax: 0.10.0
libtpu: 0.0.40
codegen_flags: <defaults>
</compile_context>

<pallas_src>
import jax
import jax.numpy as jnp
from jax.experimental import pallas as pl
from jax.experimental.pallas import tpu as pltpu

SUBLANE = 8


def _round_up(v, m):
    return ((v + m - 1) // m) * m


def intrusion_net_kernel(x_ref, w1_ref, b1_ref, w2_ref, b2_ref, w3_ref, b3_ref, o_ref):
    # fc1 + ReLU (f32 MXU accumulation)
    h1 = jnp.dot(x_ref[...], w1_ref[...], preferred_element_type=jnp.float32)
    h1 = jnp.maximum(h1 + b1_ref[...], 0.0)
    # fc2 + ReLU
    h2 = jnp.dot(h1, w2_ref[...], preferred_element_type=jnp.float32)
    h2 = jnp.maximum(h2 + b2_ref[...], 0.0)
    # fc3 (logits, no activation)
    out = jnp.dot(h2, w3_ref[...], preferred_element_type=jnp.float32)
    o_ref[...] = (out + b3_ref[...]).astype(o_ref.dtype)


def intrusion_net_forward(x, params, *, block_batch=2048):
    """x: [B, input_dim] float32. params: dict of f32 w1,b1,w2,b2,w3,b3.

    Returns f32 logits [B, num_classes]."""
    w1, b1 = params["w1"], params["b1"]
    w2, b2 = params["w2"], params["b2"]
    w3, b3 = params["w3"], params["b3"]

    B, input_dim = x.shape
    hidden1 = w1.shape[1]       # 128
    hidden2 = w2.shape[1]       # 64
    num_classes = w3.shape[1]   # e.g. 8

    # --- batch tile selection -------------------------------------------------
    # Large tile to amortize per-step overhead, but guarantee >= 2 grid steps
    # (v7x has 2 TensorCores; a 1-step grid would leave half the chip idle).
    tb = min(block_batch, _round_up(B, SUBLANE))
    if B > SUBLANE:
        tb = min(tb, _round_up(pl.cdiv(B, 2), SUBLANE))
    tb = max(SUBLANE, _round_up(tb, SUBLANE))
    grid = (pl.cdiv(B, tb),)

    x_spec = pl.BlockSpec((tb, input_dim), lambda i: (i, 0))
    out_spec = pl.BlockSpec((tb, num_classes), lambda i: (i, 0))
    # Constant index_map -> weights/biases fetched once and stay resident.
    const_spec = lambda shape: pl.BlockSpec(shape, lambda i: (0, 0))

    weight_bytes = 4 * (w1.size + b1.size + w2.size + b2.size + w3.size + b3.size)
    cost = pl.CostEstimate(
        flops=2 * B * (input_dim * hidden1 + hidden1 * hidden2 + hidden2 * num_classes),
        transcendentals=0,
        bytes_accessed=B * input_dim * 4 + B * num_classes * 4 + weight_bytes,
    )

    out = pl.pallas_call(
        intrusion_net_kernel,
        out_shape=jax.ShapeDtypeStruct((B, num_classes), jnp.float32),
        grid=grid,
        in_specs=[
            x_spec,
            const_spec((input_dim, hidden1)),
            const_spec((1, hidden1)),
            const_spec((hidden1, hidden2)),
            const_spec((1, hidden2)),
            const_spec((hidden2, num_classes)),
            const_spec((1, num_classes)),
        ],
        out_specs=out_spec,
        compiler_params=pltpu.CompilerParams(
            dimension_semantics=("parallel",),
        ),
        cost_estimate=cost,
    )(x, w1, b1, w2, b2, w3, b3)

    return out


def init_params(key, input_dim, num_classes):
    """Deterministic init mimicking PyTorch Linear default (uniform +/- 1/sqrt(fan_in))."""
    def linear(key, fan_in, fan_out):
        kw, kb = jax.random.split(key)
        bound = 1.0 / jnp.sqrt(fan_in)
        w = jax.random.uniform(kw, (fan_in, fan_out), jnp.float32, -bound, bound)
        b = jax.random.uniform(kb, (1, fan_out), jnp.float32, -bound, bound)
        return w, b

    k1, k2, k3 = jax.random.split(key, 3)
    w1, b1 = linear(k1, input_dim, 128)
    w2, b2 = linear(k2, 128, 64)
    w3, b3 = linear(k3, 64, num_classes)
    return {"w1": w1, "b1": b1, "w2": w2, "b2": b2, "w3": w3, "b3": b3}


def reference_forward(x, params):
    """Pure-f32 reference matching the PyTorch module semantics."""
    h1 = jnp.maximum(
        jnp.dot(x, params["w1"], preferred_element_type=jnp.float32) + params["b1"], 0.0)
    h2 = jnp.maximum(
        jnp.dot(h1, params["w2"], preferred_element_type=jnp.float32) + params["b2"], 0.0)
    return jnp.dot(h2, params["w3"], preferred_element_type=jnp.float32) + params["b3"]


if __name__ == "__main__":
    # Small shapes; batch not a multiple of the tile to exercise the masked
    # edge-block tail, and sized so the default tb cap yields a 2-step grid.
    batch = 300
    input_dim = 32
    num_classes = 8

    key = jax.random.PRNGKey(0)
    kx, kp = jax.random.split(key)
    x = jax.random.normal(kx, (batch, input_dim), jnp.float32)
    params = init_params(kp, input_dim, num_classes)

    out = intrusion_net_forward(x, params)
    out = jax.block_until_ready(out)

    ref = reference_forward(x, params)
    assert out.shape == (batch, num_classes)
    assert bool(jnp.all(jnp.isfinite(out)))
    assert jnp.allclose(out, ref, atol=2e-2, rtol=2e-2)

    print("KERNEL_OK")
</pallas_src>

<mosaic_0001>
module attributes {stable_mosaic.version = 11 : i64} {
  func.func @intrusion_net_kernel(%arg0: i32, %arg1: memref<152x32xf32, #tpu.memory_space<vmem>>, %arg2: memref<32x128xf32, #tpu.memory_space<vmem>>, %arg3: memref<1x128xf32, #tpu.memory_space<vmem>>, %arg4: memref<128x64xf32, #tpu.memory_space<vmem>>, %arg5: memref<1x64xf32, #tpu.memory_space<vmem>>, %arg6: memref<64x8xf32, #tpu.memory_space<vmem>>, %arg7: memref<1x8xf32, #tpu.memory_space<vmem>>, %arg8: memref<152x8xf32, #tpu.memory_space<vmem>>) attributes {dimension_semantics = [#tpu.dimension_semantics<parallel>], iteration_bounds = array<i64: 2>, scalar_prefetch = 0 : i64, scratch_operands = 0 : i64, tpu.core_type = #tpu.core_type<tc>, window_params = [{transform_indices = @transform_0, window_bounds = array<i64: 152, 32>}, {pipeline_mode = #tpu.pipeline_mode<synchronous>, transform_indices = @transform_1, window_bounds = array<i64: 32, 128>}, {pipeline_mode = #tpu.pipeline_mode<synchronous>, transform_indices = @transform_2, window_bounds = array<i64: 1, 128>}, {pipeline_mode = #tpu.pipeline_mode<synchronous>, transform_indices = @transform_3, window_bounds = array<i64: 128, 64>}, {pipeline_mode = #tpu.pipeline_mode<synchronous>, transform_indices = @transform_4, window_bounds = array<i64: 1, 64>}, {pipeline_mode = #tpu.pipeline_mode<synchronous>, transform_indices = @transform_5, window_bounds = array<i64: 64, 8>}, {pipeline_mode = #tpu.pipeline_mode<synchronous>, transform_indices = @transform_6, window_bounds = array<i64: 1, 8>}, {transform_indices = @transform_7, window_bounds = array<i64: 152, 8>}]} {
    %c0 = arith.constant 0 : index
    %c0_0 = arith.constant 0 : index
    %0 = vector.load %arg1[%c0, %c0_0] : memref<152x32xf32, #tpu.memory_space<vmem>>, vector<152x32xf32>
    %c0_1 = arith.constant 0 : index
    %c0_2 = arith.constant 0 : index
    %1 = vector.load %arg2[%c0_1, %c0_2] : memref<32x128xf32, #tpu.memory_space<vmem>>, vector<32x128xf32>
    %cst = arith.constant dense<0.000000e+00> : vector<152x128xf32>
    %2 = tpu.matmul %0, %1, %cst {dimension_numbers = #tpu.dot_dimension_numbers<[1], [0], [0], [1], [0, 0, 1, 1], [], []>} : vector<152x32xf32>, vector<32x128xf32>, vector<152x128xf32> -> vector<152x128xf32>
    %c0_3 = arith.constant 0 : index
    %c0_4 = arith.constant 0 : index
    %3 = vector.load %arg3[%c0_3, %c0_4] : memref<1x128xf32, #tpu.memory_space<vmem>>, vector<1x128xf32>
    %4 = vector.broadcast %3 : vector<1x128xf32> to vector<152x128xf32>
    %5 = arith.addf %2, %4 : vector<152x128xf32>
    %cst_5 = arith.constant 0.000000e+00 : f32
    %6 = vector.broadcast %cst_5 : f32 to vector<152x128xf32>
    %7 = arith.maximumf %5, %6 : vector<152x128xf32>
    %c0_6 = arith.constant 0 : index
    %c0_7 = arith.constant 0 : index
    %8 = vector.load %arg4[%c0_6, %c0_7] : memref<128x64xf32, #tpu.memory_space<vmem>>, vector<128x64xf32>
    %cst_8 = arith.constant dense<0.000000e+00> : vector<152x64xf32>
    %9 = tpu.matmul %7, %8, %cst_8 {dimension_numbers = #tpu.dot_dimension_numbers<[1], [0], [0], [1], [0, 0, 1, 1], [], []>} : vector<152x128xf32>, vector<128x64xf32>, vector<152x64xf32> -> vector<152x64xf32>
    %c0_9 = arith.constant 0 : index
    %c0_10 = arith.constant 0 : index
    %10 = vector.load %arg5[%c0_9, %c0_10] : memref<1x64xf32, #tpu.memory_space<vmem>>, vector<1x64xf32>
    %11 = vector.broadcast %10 : vector<1x64xf32> to vector<152x64xf32>
    %12 = arith.addf %9, %11 : vector<152x64xf32>
    %cst_11 = arith.constant 0.000000e+00 : f32
    %13 = vector.broadcast %cst_11 : f32 to vector<152x64xf32>
    %14 = arith.maximumf %12, %13 : vector<152x64xf32>
    %c0_12 = arith.constant 0 : index
    %c0_13 = arith.constant 0 : index
    %15 = vector.load %arg6[%c0_12, %c0_13] : memref<64x8xf32, #tpu.memory_space<vmem>>, vector<64x8xf32>
    %cst_14 = arith.constant dense<0.000000e+00> : vector<152x8xf32>
    %16 = tpu.matmul %14, %15, %cst_14 {dimension_numbers = #tpu.dot_dimension_numbers<[1], [0], [0], [1], [0, 0, 1, 1], [], []>} : vector<152x64xf32>, vector<64x8xf32>, vector<152x8xf32> -> vector<152x8xf32>
    %c0_15 = arith.constant 0 : index
    %c0_16 = arith.constant 0 : index
    %17 = vector.load %arg7[%c0_15, %c0_16] : memref<1x8xf32, #tpu.memory_space<vmem>>, vector<1x8xf32>
    %18 = vector.broadcast %17 : vector<1x8xf32> to vector<152x8xf32>
    %19 = arith.addf %16, %18 : vector<152x8xf32>
    %c0_17 = arith.constant 0 : index
    %c0_18 = arith.constant 0 : index
    %20 = vector.load %arg8[%c0_17, %c0_18] : memref<152x8xf32, #tpu.memory_space<vmem>>, vector<152x8xf32>
    tpu.vector_store %arg8[%c0_17, %c0_18], %19 {strides = array<i32>} : memref<152x8xf32, #tpu.memory_space<vmem>>, vector<152x8xf32>,
    return
  }
  func.func @transform_0(%arg0: i32) -> (i32, i32) {
    %c0_i32 = arith.constant 0 : i32
    %c0_i32_0 = arith.constant 0 : i32
    return %arg0, %c0_i32 : i32, i32
  }
  func.func @transform_1(%arg0: i32) -> (i32, i32) {
    %c0_i32 = arith.constant 0 : i32
    %c0_i32_0 = arith.constant 0 : i32
    %c0_i32_1 = arith.constant 0 : i32
    return %c0_i32, %c0_i32_0 : i32, i32
  }
  func.func @transform_2(%arg0: i32) -> (i32, i32) {
    %c0_i32 = arith.constant 0 : i32
    %c0_i32_0 = arith.constant 0 : i32
    %c0_i32_1 = arith.constant 0 : i32
    return %c0_i32, %c0_i32_0 : i32, i32
  }
  func.func @transform_3(%arg0: i32) -> (i32, i32) {
    %c0_i32 = arith.constant 0 : i32
    %c0_i32_0 = arith.constant 0 : i32
    %c0_i32_1 = arith.constant 0 : i32
    return %c0_i32, %c0_i32_0 : i32, i32
  }
  func.func @transform_4(%arg0: i32) -> (i32, i32) {
    %c0_i32 = arith.constant 0 : i32
    %c0_i32_0 = arith.constant 0 : i32
    %c0_i32_1 = arith.constant 0 : i32
    return %c0_i32, %c0_i32_0 : i32, i32
  }
  func.func @transform_5(%arg0: i32) -> (i32, i32) {
    %c0_i32 = arith.constant 0 : i32
    %c0_i32_0 = arith.constant 0 : i32
    %c0_i32_1 = arith.constant 0 : i32
    return %c0_i32, %c0_i32_0 : i32, i32
  }
  func.func @transform_6(%arg0: i32) -> (i32, i32) {
    %c0_i32 = arith.constant 0 : i32
    %c0_i32_0 = arith.constant 0 : i32
    %c0_i32_1 = arith.constant 0 : i32
    return %c0_i32, %c0_i32_0 : i32, i32
  }
  func.func @transform_7(%arg0: i32) -> (i32, i32) {
    %c0_i32 = arith.constant 0 : i32
    %c0_i32_0 = arith.constant 0 : i32
    return %arg0, %c0_i32 : i32, i32
  }
}

</mosaic_0001>

<bundles_post_ra>
// kernel: tpu_custom_call.1
= control target key start
LH: loop header
LB: loop body
LE: loop exit
PB: predicated region body
PF: predicated region fallthrough
CT: control target
= control target key end

     0   :  { %s1530_s24 = smov 0   ;;  %s1948_s0 = inlined_call_operand.vmem [shape: f32[300,32], index: 0, kind: input, shape index: {}]   ;;  %s1949_s1 = inlined_call_operand.vmem [shape: f32[32,128], index: 1, kind: input, shape index: {}]   ;;  %s1950_s2 = inlined_call_operand.vmem [shape: f32[1,128], index: 2, kind: input, shape index: {}]   ;;  %s1951_s3 = inlined_call_operand.vmem [shape: f32[128,64], index: 3, kind: input, shape index: {}]   ;;  %s1952_s4 = inlined_call_operand.vmem [shape: f32[1,64], index: 4, kind: input, shape index: {}]   ;;  %s1953_s5 = inlined_call_operand.vmem [shape: f32[64,8], index: 5, kind: input, shape index: {}]   ;;  %s1954_s6 = inlined_call_operand.vmem [shape: f32[1,8], index: 6, kind: input, shape index: {}]   ;;  %s1955_s7 = inlined_call_operand.vmem [shape: f32[300,8], index: 7, kind: output, shape index: {}]  }
   0x1 LB: > { %s1060_s25 = sadd.s32 4294967295, %s1485_s24   ;;  %p1064_p0 = scmp.ge.s32.totalorder %s1485_s24, 1  ;;  %s1485_s24 = sphi %s1530_s24, %s17_s24  }
   0x2   : > { %p238_p1 = scmp.lt.s32.totalorder %s1485_s24, 3 }
   0x4   : > { %p239_p2 = pnand %p1064_p0, %p238_p1 }
   0x5   : > { %v301_v0 = vld [vmem:[%s1949_s1] sm:$0xff] (!%p239_p2)  ;;  %v302_v1 = vld [vmem:[%s1949_s1 + $0x8] sm:$0xff] (!%p239_p2)  ;;  %v303_v2 = vld [vmem:[%s1949_s1 + $0x10] sm:$0xff] (!%p239_p2)  ;;  %v1487_v3 = vmov (!%p239_p2), 0.0|0.0   ;;  %vm1488_vm0 = vmmov (!%p239_p2), 0   ;;  %v1489_v6 = vmov (!%p239_p2), 0.0  }
   0x6   : > { %242 = sbr.rel (%p239_p2) target bundleno = 736 (0x2e0), region = 48  ;;  %1422 = vmatprep.subr.bf16.mxu0 (!%p239_p2), %v1487_v3  ;;  %v1423_v4 = vpack.c.bf16 (!%p239_p2), %v302_v1, %v301_v0  ;;  %v304_v5 = vld [vmem:[%s1949_s1 + $0x18] sm:$0xff] (!%p239_p2)  ;;  %1203 = vmatprep.mubr.msk.f32.mxu0 (!%p239_p2), %vm1488_vm0, %v1489_v6  ;;  %vm312_vm1 = vcmask (!%p239_p2), 261120   ;;  %v549_v8 = vld [vmem:[%s1951_s3] sm:$0xff] (!%p239_p2)  ;;  %v550_v9 = vld [vmem:[%s1951_s3 + $0x8] sm:$0xff] (!%p239_p2)  ;;  %vm766_vm2 = vcmask (!%p239_p2), 523264  }
   0x7   : > { %s270_s11 = smul.u32 (!%p239_p2), 19, %s1060_s25  ;;  %1464 = vmatprep.subr.bf16.mxu1 (!%p239_p2), %v1487_v3  ;;  %1233 = vmatprep.mubr.msk.f32.mxu1 (!%p239_p2), %vm1488_vm0, %v1489_v6  ;;  %v1426_v7 = vpack.c.bf16 (!%p239_p2), %v304_v5, %v303_v2  ;;  %v1429_v12 = vpack.c.bf16 (!%p239_p2), %v550_v9, %v549_v8  ;;  %v551_v14 = vld [vmem:[%s1951_s3 + $0x10] sm:$0xff] (!%p239_p2)  ;;  %v552_v15 = vld [vmem:[%s1951_s3 + $0x18] sm:$0xff] (!%p239_p2)  ;;  %v553_v19 = vld [vmem:[%s1951_s3 + $0x20] sm:$0xff] (!%p239_p2)  ;;  %vm984_vm3 = vcmask (!%p239_p2), 64512  }
   0x8   : > { %1424 = vmatpush3.bf16.msra.mxu0 (!%p239_p2), %v1423_v4  ;;  %1466 = vmatpush3.bf16.msra.mxu1 (!%p239_p2), %v1423_v4  ;;  %v1432_v18 = vpack.c.bf16 (!%p239_p2), %v552_v15, %v551_v14  ;;  %v554_v20 = vld [vmem:[%s1951_s3 + $0x28] sm:$0xff] (!%p239_p2)  ;;  %v555_v24 = vld [vmem:[%s1951_s3 + $0x30] sm:$0xff] (!%p239_p2)  ;;  %v556_v25 = vld [vmem:[%s1951_s3 + $0x38] sm:$0xff] (!%p239_p2) }
   0x9   : > { %p271_p3 = scmp.lt.s32.totalorder (!%p239_p2), %s270_s11, 37  ;;  %1425 = vmatprep.subr.bf16.mxu0 (!%p239_p2), %v1487_v3  ;;  %1465 = vmatprep.subr.bf16.mxu1 (!%p239_p2), %v1487_v3  ;;  %v1435_v23 = vpack.c.bf16 (!%p239_p2), %v554_v20, %v553_v19  ;;  %v1438_v28 = vpack.c.bf16 (!%p239_p2), %v556_v25, %v555_v24  ;;  %v557_v29 = vld [vmem:[%s1951_s3 + $0x40] sm:$0xff] (!%p239_p2)  ;;  %v558_v30 = vld [vmem:[%s1951_s3 + $0x48] sm:$0xff] (!%p239_p2)  ;;  %v559_v34 = vld [vmem:[%s1951_s3 + $0x50] sm:$0xff] (!%p239_p2) }
   0xa   : > { %v1441_v33 = vpack.c.bf16 (!%p239_p2), %v558_v30, %v557_v29  ;;  %v560_v35 = vld [vmem:[%s1951_s3 + $0x58] sm:$0xff] (!%p239_p2)  ;;  %v561_v39 = vld [vmem:[%s1951_s3 + $0x60] sm:$0xff] (!%p239_p2)  ;;  %v562_v40 = vld [vmem:[%s1951_s3 + $0x68] sm:$0xff] (!%p239_p2) }
   0xb   : > { %v1444_v38 = vpack.c.bf16 (!%p239_p2), %v560_v35, %v559_v34  ;;  %v1447_v43 = vpack.c.bf16 (!%p239_p2), %v562_v40, %v561_v39  ;;  %v563_v48 = vld [vmem:[%s1951_s3 + $0x70] sm:$0xff] (!%p239_p2)  ;;  %v564_v49 = vld [vmem:[%s1951_s3 + $0x78] sm:$0xff] (!%p239_p2)  ;;  %v751_v51 = vld [vmem:[%s1953_s5] sm:$0xff] (!%p239_p2) }
   0xc   : > { %1427 = vmatpush3.bf16.msra.mxu0 (!%p239_p2), %v1426_v7  ;;  %1467 = vmatpush3.bf16.msra.mxu1 (!%p239_p2), %v1426_v7  ;;  %v1450_v50 = vpack.c.bf16 (!%p239_p2), %v564_v49, %v563_v48  ;;  %v752_v52 = vld [vmem:[%s1953_s5 + $0x8] sm:$0xff] (!%p239_p2)  ;;  %v753_v53 = vld [vmem:[%s1953_s5 + $0x10] sm:$0xff] (!%p239_p2)  ;;  %v754_v55 = vld [vmem:[%s1953_s5 + $0x18] sm:$0xff] (!%p239_p2) }
   0xd   : > { %s1957_s11 = smov (!%p271_p3, %s270_s11), 37  ;;  %1428 = vmatprep.subr.bf16.mxu1 %v1487_v3  ;;  %1452 = vmatprep.subr.bf16.mxu0 %v1487_v3  ;;  %v1453_v54 = vpack.c.bf16 %v752_v52, %v751_v51  ;;  %v1456_v56 = vpack.c.bf16 %v754_v55, %v753_v53  ;;  %v755_v57 = vld [vmem:[%s1953_s5 + $0x20] sm:$0xff]  ;;  %v756_v58 = vld [vmem:[%s1953_s5 + $0x28] sm:$0xff]  ;;  %v757_v60 = vld [vmem:[%s1953_s5 + $0x30] sm:$0xff] }
   0xe   : > { %s1065_s12 = sshll.u32 %s1957_s11, 3  ;;  %v1459_v59 = vpack.c.bf16 %v756_v58, %v755_v57  ;;  %v758_v61 = vld [vmem:[%s1953_s5 + $0x38] sm:$0xff]  ;;  %v1731_v63 = vld [vmem:[%s1950_s2] ss:$0 sm:$0xff] }
   0xf   : > { %s1566_s15 = scalar_lea.vmem %s1948_s0, %s1065_s12  ;;  %v1462_v62 = vpack.c.bf16 %v758_v61, %v757_v60  ;;  %s1886_s10 = scalar_lea.vmem %s1955_s7, %s1065_s12 }
  0x10   : > { %v282_v10 = vld [vmem:[%s1566_s15] sm:$0xff]  ;;  %v283_v11 = vld [vmem:[%s1566_s15 + $0x8] sm:$0xff]  ;;  %v292_v13 = vld [vmem:[%s1566_s15 + $0x50] sm:$0xff] }
  0x11   : > { %1204 = vmatmul.mubr.msk.f32.vlgmr.msra.gmra.mrb[0].mxu0 %vm312_vm1, %v282_v10  ;;  %1234 = vmatmul.mubr.msk.f32.vlgmr.msra.gmra.mrb[0].mxu1 %vm312_vm1, %v292_v13  ;;  %v293_v16 = vld [vmem:[%s1566_s15 + $0x58] sm:$0xff]  ;;  %v284_v17 = vld [vmem:[%s1566_s15 + $0x10] sm:$0xff]  ;;  %v294_v21 = vld [vmem:[%s1566_s15 + $0x60] sm:$0xff] }
  0x12   : > { %1206 = vmatprep.mubr.msk.f32.mxu0 %vm1488_vm0, %v1489_v6  ;;  %1236 = vmatprep.mubr.msk.f32.mxu1 %vm1488_vm0, %v1489_v6  ;;  %v285_v22 = vld [vmem:[%s1566_s15 + $0x18] sm:$0xff]  ;;  %v295_v26 = vld [vmem:[%s1566_s15 + $0x68] sm:$0xff]  ;;  %v286_v27 = vld [vmem:[%s1566_s15 + $0x20] sm:$0xff] }
  0x13   : > { %1430 = vmatpush3.bf16.msra.mxu1 %v1429_v12  ;;  %v296_v31 = vld [vmem:[%s1566_s15 + $0x70] sm:$0xff]  ;;  %v287_v32 = vld [vmem:[%s1566_s15 + $0x28] sm:$0xff]  ;;  %v297_v36 = vld [vmem:[%s1566_s15 + $0x78] sm:$0xff]  ;;  %1454 = vmatpush3.bf16.msra.mxu0 %v1453_v54 }
  0x14   : > { %1431 = vmatprep.subr.bf16.mxu1 %v1487_v3  ;;  %v288_v37 = vld [vmem:[%s1566_s15 + $0x30] sm:$0xff]  ;;  %v298_v41 = vld [vmem:[%s1566_s15 + $0x80] sm:$0xff]  ;;  %v289_v42 = vld [vmem:[%s1566_s15 + $0x38] sm:$0xff]  ;;  %1455 = vmatprep.subr.bf16.mxu0 %v1487_v3 }
  0x15   : > { %1207 = vmatmul.mubr.msk.f32.gmra.mrb[2].mxu0 %vm312_vm1, %v283_v11  ;;  %1237 = vmatmul.mubr.msk.f32.gmra.mrb[2].mxu1 %vm312_vm1, %v293_v16  ;;  %v299_v44 = vld [vmem:[%s1566_s15 + $0x88] sm:$0xff]  ;;  %v290_v45 = vld [vmem:[%s1566_s15 + $0x40] sm:$0xff]  ;;  %v300_v46 = vld [vmem:[%s1566_s15 + $0x90] sm:$0xff] }
  0x16   : > { %1209 = vmatprep.mubr.msk.f32.mxu0 %vm1488_vm0, %v1489_v6  ;;  %1239 = vmatprep.mubr.msk.f32.mxu1 %vm1488_vm0, %v1489_v6  ;;  %v291_v47 = vld [vmem:[%s1566_s15 + $0x48] sm:$0xff] }
  0x17   : > { %1433 = vmatpush3.bf16.msra.mxu1 %v1432_v18  ;;  %1457 = vmatpush3.bf16.msra.mxu0 %v1456_v56 }
  0x18   : > { %1434 = vmatprep.subr.bf16.mxu1 %v1487_v3  ;;  %1458 = vmatprep.subr.bf16.mxu0 %v1487_v3 }
  0x19   : > { %1210 = vmatmul.mubr.msk.f32.gmra.mrb[4].mxu0 %vm312_vm1, %v284_v17  ;;  %1240 = vmatmul.mubr.msk.f32.gmra.mrb[4].mxu1 %vm312_vm1, %v294_v21 }
  0x1a   : > { %1212 = vmatprep.mubr.msk.f32.mxu0 %vm1488_vm0, %v1489_v6  ;;  %1242 = vmatprep.mubr.msk.f32.mxu1 %vm1488_vm0, %v1489_v6 }
  0x1b   : > { %1436 = vmatpush3.bf16.msra.mxu1 %v1435_v23  ;;  %1460 = vmatpush3.bf16.msra.mxu0 %v1459_v59 }
  0x1c   : > { %1437 = vmatprep.subr.bf16.mxu1 %v1487_v3  ;;  %1461 = vmatprep.subr.bf16.mxu0 %v1487_v3 }
  0x1d   : > { %1213 = vmatmul.mubr.msk.f32.gmra.mrb[6].mxu0 %vm312_vm1, %v285_v22  ;;  %1243 = vmatmul.mubr.msk.f32.gmra.mrb[6].mxu1 %vm312_vm1, %v295_v26 }
  0x1e   : > { %1215 = vmatprep.mubr.msk.f32.mxu0 %vm1488_vm0, %v1489_v6  ;;  %1245 = vmatprep.mubr.msk.f32.mxu1 %vm1488_vm0, %v1489_v6 }
  0x1f   : > { %1439 = vmatpush3.bf16.msra.mxu1 %v1438_v28  ;;  %1463 = vmatpush3.bf16.msra.mxu0 %v1462_v62 }
  0x20   : > { %1440 = vmatprep.subr.bf16.mxu1 %v1487_v3 }
  0x21   : > { %1216 = vmatmul.mubr.msk.f32.gmra.mrb[8].mxu0 %vm312_vm1, %v286_v27  ;;  %1246 = vmatmul.mubr.msk.f32.gmra.mrb[8].mxu1 %vm312_vm1, %v296_v31 }
  0x22   : > { %1218 = vmatprep.mubr.msk.f32.mxu0 %vm1488_vm0, %v1489_v6  ;;  %1248 = vmatprep.mubr.msk.f32.mxu1 %vm1488_vm0, %v1489_v6 }
  0x23   : > { %1442 = vmatpush3.bf16.msra.mxu1 %v1441_v33 }
  0x24   : > { %1443 = vmatprep.subr.bf16.mxu1 %v1487_v3 }
  0x25   : > { %1219 = vmatmul.mubr.msk.f32.gmra.mrb[10].mxu0 %vm312_vm1, %v287_v32  ;;  %1249 = vmatmul.mubr.msk.f32.gmra.mrb[10].mxu1 %vm312_vm1, %v297_v36 }
  0x26   : > { %1221 = vmatprep.mubr.msk.f32.mxu0 %vm1488_vm0, %v1489_v6  ;;  %1251 = vmatprep.mubr.msk.f32.mxu1 %vm1488_vm0, %v1489_v6 }
  0x27   : > { %1445 = vmatpush3.bf16.msra.mxu1 %v1444_v38 }
  0x28   : > { %1446 = vmatprep.subr.bf16.mxu1 %v1487_v3 }
  0x29   : > { %1222 = vmatmul.mubr.msk.f32.gmra.mrb[12].mxu0 %vm312_vm1, %v288_v37  ;;  %1252 = vmatmul.mubr.msk.f32.gmra.mrb[12].mxu1 %vm312_vm1, %v298_v41 }
  0x2a   : > { %1224 = vmatprep.mubr.msk.f32.mxu0 %vm1488_vm0, %v1489_v6  ;;  %1254 = vmatprep.mubr.msk.f32.mxu1 %vm1488_vm0, %v1489_v6 }
  0x2b   : > { %1448 = vmatpush3.bf16.msra.mxu1 %v1447_v43 }
  0x2c   : > { %1449 = vmatprep.subr.bf16.mxu1 %v1487_v3 }
  0x2d   : > { %1225 = vmatmul.mubr.msk.f32.gmra.mrb[14].mxu0 %vm312_vm1, %v289_v42  ;;  %1255 = vmatmul.mubr.msk.f32.gmra.mrb[14].mxu1 %vm312_vm1, %v299_v44 }
  0x2e   : > { %1227 = vmatprep.mubr.msk.f32.mxu0 %vm1488_vm0, %v1489_v6  ;;  %1257 = vmatprep.mubr.msk.f32.mxu1 %vm1488_vm0, %v1489_v6 }
  0x2f   : > { %1451 = vmatpush3.bf16.msra.mxu1 %v1450_v50 }
  0x31   : > { %1228 = vmatmul.mubr.msk.f32.gmra.mrb[16].mxu0 %vm312_vm1, %v290_v45  ;;  %1258 = vmatmul.mubr.msk.f32.gmra.mrb[16].mxu1 %vm312_vm1, %v300_v46 }
  0x32   : > { %1230 = vmatprep.mubr.msk.f32.mxu0 %vm1488_vm0, %v1489_v6  ;;  %1292 = vmatprep.mubr.msk.f32.mxu1 %vm1488_vm0, %v1489_v6 }
  0x35   : > { %1231 = vmatmul.mubr.msk.f32.gmra.mrb[18].mxu0 %vm312_vm1, %v291_v47 }
  0x36   : > { %1365 = vmatprep.mubr.msk.f32.mxu0 %vm1488_vm0, %v1489_v6 }
  0xe4   : > { %v436_v0 = vpop.f32.mrb[0].mxu0  ;;  %v1734_v5 = vpop.f32.mrb[0].mxu1 }
  0xe5   : > { %v437_v1 = vadd.f32 %v1731_v63, %v436_v0  ;;  %v1205_v2 = vpop.f32.mrb[1].mxu0  ;;  %v1235_v8 = vpop.f32.mrb[1].mxu1  ;;  %v487_v61 = vadd.f32 %v1731_v63, %v1734_v5 }
  0xe7   : > { %v530_v4 = vmax.f32 %v437_v1, 0.0  ;;  %v540_v0 = vmax.f32 %v487_v61, 0.0 }
  0xe8   : > { %v441_v7 = vpop.f32.mrb[2].mxu0  ;;  %v1739_v11 = vpop.f32.mrb[2].mxu1 }
  0xe9   : > { %v442_v9 = vadd.f32 %v1731_v63, %v441_v7  ;;  %v1208_v10 = vpop.f32.mrb[3].mxu0  ;;  %1293 = vmatmul.mubr.f32.vlgmr.msra.gmra.mrb[18].mxu1 %v530_v4  ;;  %v1238_v13 = vpop.f32.mrb[3].mxu1  ;;  %v492_v1 = vadd.f32 %v1731_v63, %v1739_v11 }
  0xea   : > { %1295 = vmatprep.mubr.msk.f32.mxu1 %vm1488_vm0, %v1489_v6 }
  0xeb   : > { %v531_v3 = vmax.f32 %v442_v9, 0.0  ;;  %v541_v2 = vmax.f32 %v492_v1, 0.0 }
  0xec   : > { %v446_v12 = vpop.f32.mrb[4].mxu0  ;;  %v1744_v17 = vpop.f32.mrb[4].mxu1 }
  0xed   : > { %v447_v14 = vadd.f32 %v1731_v63, %v446_v12  ;;  %v1211_v15 = vpop.f32.mrb[5].mxu0  ;;  %1296 = vmatmul.mubr.f32.gmra.mrb[20].mxu1 %v531_v3  ;;  %v1241_v19 = vpop.f32.mrb[5].mxu1  ;;  %v497_v4 = vadd.f32 %v1731_v63, %v1744_v17 }
  0xee   : > { %1298 = vmatprep.mubr.msk.f32.mxu1 %vm1488_vm0, %v1489_v6 }
  0xef   : > { %v532_v16 = vmax.f32 %v447_v14, 0.0  ;;  %v542_v5 = vmax.f32 %v497_v4, 0.0 }
  0xf0   : > { %v451_v18 = vpop.f32.mrb[6].mxu0  ;;  %v501_v23 = vpop.f32.mrb[6].mxu1 }
  0xf1   : > { %v452_v20 = vadd.f32 %v1731_v63, %v451_v18  ;;  %v1214_v21 = vpop.f32.mrb[7].mxu0  ;;  %1299 = vmatmul.mubr.f32.gmra.mrb[22].mxu1 %v532_v16  ;;  %v1244_v25 = vpop.f32.mrb[7].mxu1  ;;  %v502_v7 = vadd.f32 %v1731_v63, %v501_v23 }
  0xf2   : > { %1301 = vmatprep.mubr.msk.f32.mxu1 %vm1488_vm0, %v1489_v6 }
  0xf3   : > { %v533_v22 = vmax.f32 %v452_v20, 0.0  ;;  %v543_v8 = vmax.f32 %v502_v7, 0.0 }
  0xf4   : > { %v456_v24 = vpop.f32.mrb[8].mxu0  ;;  %v506_v29 = vpop.f32.mrb[8].mxu1 }
  0xf5   : > { %v457_v26 = vadd.f32 %v1731_v63, %v456_v24  ;;  %v1217_v27 = vpop.f32.mrb[9].mxu0  ;;  %1302 = vmatmul.mubr.f32.gmra.mrb[24].mxu1 %v533_v22  ;;  %v1247_v31 = vpop.f32.mrb[9].mxu1  ;;  %v507_v9 = vadd.f32 %v1731_v63, %v506_v29 }
  0xf6   : > { %1304 = vmatprep.mubr.msk.f32.mxu1 %vm1488_vm0, %v1489_v6 }
  0xf7   : > { %v534_v28 = vmax.f32 %v457_v26, 0.0  ;;  %v544_v10 = vmax.f32 %v507_v9, 0.0 }
  0xf8   : > { %v461_v30 = vpop.f32.mrb[10].mxu0  ;;  %v511_v35 = vpop.f32.mrb[10].mxu1 }
  0xf9   : > { %v462_v32 = vadd.f32 %v1731_v63, %v461_v30  ;;  %v1220_v33 = vpop.f32.mrb[11].mxu0  ;;  %1305 = vmatmul.mubr.f32.gmra.mrb[26].mxu1 %v534_v28  ;;  %v1250_v37 = vpop.f32.mrb[11].mxu1  ;;  %v512_v3 = vadd.f32 %v1731_v63, %v511_v35 }
  0xfa   : > { %1307 = vmatprep.mubr.msk.f32.mxu1 %vm1488_vm0, %v1489_v6 }
  0xfb   : > { %v535_v34 = vmax.f32 %v462_v32, 0.0  ;;  %v545_v11 = vmax.f32 %v512_v3, 0.0 }
  0xfc   : > { %v466_v36 = vpop.f32.mrb[12].mxu0  ;;  %v516_v41 = vpop.f32.mrb[12].mxu1 }
  0xfd   : > { %v467_v38 = vadd.f32 %v1731_v63, %v466_v36  ;;  %v1223_v39 = vpop.f32.mrb[13].mxu0  ;;  %1308 = vmatmul.mubr.f32.gmra.mrb[28].mxu1 %v535_v34  ;;  %v517_v43 = vadd.f32 %v1731_v63, %v516_v41  ;;  %v1253_v44 = vpop.f32.mrb[13].mxu1 }
  0xfe   : > { %1310 = vmatprep.mubr.msk.f32.mxu1 %vm1488_vm0, %v1489_v6 }
  0xff   : > { %v536_v40 = vmax.f32 %v467_v38, 0.0  ;;  %v546_v12 = vmax.f32 %v517_v43, 0.0 }
 0x100   : > { %v471_v42 = vpop.f32.mrb[14].mxu0  ;;  %v521_v48 = vpop.f32.mrb[14].mxu1 }
 0x101   : > { %v472_v45 = vadd.f32 %v1731_v63, %v471_v42  ;;  %v1226_v46 = vpop.f32.mrb[15].mxu0  ;;  %1311 = vmatmul.mubr.f32.gmra.mrb[30].mxu1 %v536_v40  ;;  %v522_v50 = vadd.f32 %v1731_v63, %v521_v48  ;;  %v1256_v51 = vpop.f32.mrb[15].mxu1 }
 0x102   : > { %1313 = vmatprep.mubr.msk.f32.mxu1 %vm1488_vm0, %v1489_v6 }
 0x103   : > { %v537_v47 = vmax.f32 %v472_v45, 0.0  ;;  %v547_v13 = vmax.f32 %v522_v50, 0.0 }
 0x104   : > { %v476_v49 = vpop.f32.mrb[16].mxu0  ;;  %v526_v55 = vpop.f32.mrb[16].mxu1 }
 0x105   : > { %v477_v52 = vadd.f32 %v1731_v63, %v476_v49  ;;  %v1229_v53 = vpop.f32.mrb[17].mxu0  ;;  %1314 = vmatmul.mubr.f32.gmra.mrb[32].mxu1 %v537_v47  ;;  %v527_v57 = vadd.f32 %v1731_v63, %v526_v55  ;;  %v1259_v58 = vpop.f32.mrb[17].mxu1 }
 0x106   : > { %1316 = vmatprep.mubr.msk.f32.mxu1 %vm1488_vm0, %v1489_v6 }
 0x107   : > { %v538_v54 = vmax.f32 %v477_v52, 0.0  ;;  %v548_v14 = vmax.f32 %v527_v57, 0.0 }
 0x108   : > { %v481_v56 = vpop.f32.mrb[18].mxu0 }
 0x109   : > { %v482_v59 = vadd.f32 %v1731_v63, %v481_v56  ;;  %v1232_v60 = vpop.f32.mrb[19].mxu0  ;;  %1317 = vmatmul.mubr.f32.gmra.mrb[34].mxu1 %v538_v54  ;;  %v1800_v63 = vld [vmem:[%s1952_s4] ss:$0 sm:$0xff] }
 0x10a   : > { %1319 = vmatprep.mubr.msk.f32.mxu1 %vm1488_vm0, %v1489_v6 }
 0x10b   : > { %v539_v62 = vmax.f32 %v482_v59, 0.0 }
 0x10d   : > { %1320 = vmatmul.mubr.f32.gmra.mrb[36].mxu1 %v539_v62 }
 0x10e   : > { %1322 = vmatprep.mubr.msk.f32.mxu1 %vm1488_vm0, %v1489_v6 }
 0x111   : > { %1323 = vmatmul.mubr.f32.gmra.mrb[38].mxu1 %v540_v0 }
 0x112   : > { %1325 = vmatprep.mubr.msk.f32.mxu1 %vm1488_vm0, %v1489_v6 }
 0x115   : > { %1326 = vmatmul.mubr.f32.gmra.mrb[40].mxu1 %v541_v2 }
 0x116   : > { %1328 = vmatprep.mubr.msk.f32.mxu1 %vm1488_vm0, %v1489_v6 }
 0x119   : > { %1329 = vmatmul.mubr.f32.gmra.mrb[42].mxu1 %v542_v5 }
 0x11a   : > { %1331 = vmatprep.mubr.msk.f32.mxu1 %vm1488_vm0, %v1489_v6 }
 0x11d   : > { %1332 = vmatmul.mubr.f32.gmra.mrb[44].mxu1 %v543_v8 }
 0x11e   : > { %1334 = vmatprep.mubr.msk.f32.mxu1 %vm1488_vm0, %v1489_v6 }
 0x121   : > { %1335 = vmatmul.mubr.f32.gmra.mrb[46].mxu1 %v544_v10 }
 0x122   : > { %1337 = vmatprep.mubr.msk.f32.mxu1 %vm1488_vm0, %v1489_v6 }
 0x125   : > { %1338 = vmatmul.mubr.f32.gmra.mrb[48].mxu1 %v545_v11 }
 0x126   : > { %1340 = vmatprep.mubr.msk.f32.mxu1 %vm1488_vm0, %v1489_v6 }
 0x129   : > { %1341 = vmatmul.mubr.f32.gmra.mrb[50].mxu1 %v546_v12 }
 0x12a   : > { %1343 = vmatprep.mubr.msk.f32.mxu1 %vm1488_vm0, %v1489_v6 }
 0x12d   : > { %1344 = vmatmul.mubr.f32.gmra.mrb[52].mxu1 %v547_v13 }
 0x12e   : > { %1346 = vmatprep.mubr.msk.f32.mxu1 %vm1488_vm0, %v1489_v6 }
 0x131   : > { %1347 = vmatmul.mubr.f32.gmra.mrb[54].mxu1 %v548_v14 }
 0x1bc   : > { %v638_v15 = vpop.f32.mrb[18].mxu1 }
 0x1bd   : > { %v639_v16 = vadd.f32 %v1800_v63, %v638_v15  ;;  %v1294_v17 = vpop.f32.mrb[19].mxu1 }
 0x1bf   : > { %v732_v18 = vmax.f32 %v639_v16, 0.0 }
 0x1c0   : > { %v643_v19 = vpop.f32.mrb[20].mxu1 }
 0x1c1   : > { %v644_v20 = vadd.f32 %v1800_v63, %v643_v19  ;;  %v1297_v21 = vpop.f32.mrb[21].mxu1  ;;  %1366 = vmatmul.mubr.msk.f32.vlgmr.msra.gmra.mrb[20].mxu0 %vm766_vm2, %v732_v18 }
 0x1c2   : > { %1368 = vmatprep.mubr.msk.f32.mxu0 %vm1488_vm0, %v1489_v6 }
 0x1c3   : > { %v733_v22 = vmax.f32 %v644_v20, 0.0 }
 0x1c4   : > { %v648_v23 = vpop.f32.mrb[22].mxu1 }
 0x1c5   : > { %v649_v24 = vadd.f32 %v1800_v63, %v648_v23  ;;  %v1300_v25 = vpop.f32.mrb[23].mxu1  ;;  %1369 = vmatmul.mubr.msk.f32.gmra.mrb[22].mxu0 %vm766_vm2, %v733_v22 }
 0x1c6   : > { %1371 = vmatprep.mubr.msk.f32.mxu0 %vm1488_vm0, %v1489_v6 }
 0x1c7   : > { %v734_v26 = vmax.f32 %v649_v24, 0.0 }
 0x1c8   : > { %v653_v27 = vpop.f32.mrb[24].mxu1 }
 0x1c9   : > { %v654_v28 = vadd.f32 %v1800_v63, %v653_v27  ;;  %v1303_v29 = vpop.f32.mrb[25].mxu1  ;;  %1372 = vmatmul.mubr.msk.f32.gmra.mrb[24].mxu0 %vm766_vm2, %v734_v26 }
 0x1ca   : > { %1374 = vmatprep.mubr.msk.f32.mxu0 %vm1488_vm0, %v1489_v6  ;;  %v1879_v29 = vld [vmem:[%s1954_s6] ss:$0 sm:$0xff] }
 0x1cb   : > { %v735_v30 = vmax.f32 %v654_v28, 0.0 }
 0x1cc   : > { %v658_v31 = vpop.f32.mrb[26].mxu1 }
 0x1cd   : > { %v659_v32 = vadd.f32 %v1800_v63, %v658_v31  ;;  %v1306_v33 = vpop.f32.mrb[27].mxu1  ;;  %1375 = vmatmul.mubr.msk.f32.gmra.mrb[26].mxu0 %vm766_vm2, %v735_v30 }
 0x1ce   : > { %1377 = vmatprep.mubr.msk.f32.mxu0 %vm1488_vm0, %v1489_v6 }
 0x1cf   : > { %v736_v34 = vmax.f32 %v659_v32, 0.0 }
 0x1d0   : > { %v663_v35 = vpop.f32.mrb[28].mxu1 }
 0x1d1   : > { %v664_v36 = vadd.f32 %v1800_v63, %v663_v35  ;;  %v1309_v37 = vpop.f32.mrb[29].mxu1  ;;  %1378 = vmatmul.mubr.msk.f32.gmra.mrb[28].mxu0 %vm766_vm2, %v736_v34 }
 0x1d2   : > { %1380 = vmatprep.mubr.msk.f32.mxu0 %vm1488_vm0, %v1489_v6 }
 0x1d3   : > { %v737_v38 = vmax.f32 %v664_v36, 0.0 }
 0x1d4   : > { %v668_v39 = vpop.f32.mrb[30].mxu1 }
 0x1d5   : > { %v669_v40 = vadd.f32 %v1800_v63, %v668_v39  ;;  %v1312_v41 = vpop.f32.mrb[31].mxu1  ;;  %1381 = vmatmul.mubr.msk.f32.gmra.mrb[30].mxu0 %vm766_vm2, %v737_v38 }
 0x1d6   : > { %1383 = vmatprep.mubr.msk.f32.mxu0 %vm1488_vm0, %v1489_v6 }
 0x1d7   : > { %v738_v42 = vmax.f32 %v669_v40, 0.0 }
 0x1d8   : > { %v673_v43 = vpop.f32.mrb[32].mxu1 }
 0x1d9   : > { %v674_v44 = vadd.f32 %v1800_v63, %v673_v43  ;;  %v1315_v45 = vpop.f32.mrb[33].mxu1  ;;  %1384 = vmatmul.mubr.msk.f32.gmra.mrb[32].mxu0 %vm766_vm2, %v738_v42 }
 0x1da   : > { %1386 = vmatprep.mubr.msk.f32.mxu0 %vm1488_vm0, %v1489_v6 }
 0x1db   : > { %v739_v46 = vmax.f32 %v674_v44, 0.0 }
 0x1dc   : > { %v678_v47 = vpop.f32.mrb[34].mxu1 }
 0x1dd   : > { %v679_v48 = vadd.f32 %v1800_v63, %v678_v47  ;;  %v1318_v49 = vpop.f32.mrb[35].mxu1  ;;  %1387 = vmatmul.mubr.msk.f32.gmra.mrb[34].mxu0 %vm766_vm2, %v739_v46 }
 0x1de   : > { %1389 = vmatprep.mubr.msk.f32.mxu0 %vm1488_vm0, %v1489_v6 }
 0x1df   : > { %v740_v50 = vmax.f32 %v679_v48, 0.0 }
 0x1e0   : > { %v683_v51 = vpop.f32.mrb[36].mxu1 }
 0x1e1   : > { %v684_v52 = vadd.f32 %v1800_v63, %v683_v51  ;;  %v1321_v53 = vpop.f32.mrb[37].mxu1  ;;  %1390 = vmatmul.mubr.msk.f32.gmra.mrb[36].mxu0 %vm766_vm2, %v740_v50 }
 0x1e2   : > { %1392 = vmatprep.mubr.msk.f32.mxu0 %vm1488_vm0, %v1489_v6 }
 0x1e3   : > { %v741_v54 = vmax.f32 %v684_v52, 0.0 }
 0x1e4   : > { %v688_v55 = vpop.f32.mrb[38].mxu1 }
 0x1e5   : > { %v689_v56 = vadd.f32 %v1800_v63, %v688_v55  ;;  %v1324_v57 = vpop.f32.mrb[39].mxu1  ;;  %1393 = vmatmul.mubr.msk.f32.gmra.mrb[38].mxu0 %vm766_vm2, %v741_v54 }
 0x1e6   : > { %1395 = vmatprep.mubr.msk.f32.mxu0 %vm1488_vm0, %v1489_v6 }
 0x1e7   : > { %v742_v58 = vmax.f32 %v689_v56, 0.0 }
 0x1e8   : > { %v693_v59 = vpop.f32.mrb[40].mxu1 }
 0x1e9   : > { %v694_v60 = vadd.f32 %v1800_v63, %v693_v59  ;;  %v1327_v61 = vpop.f32.mrb[41].mxu1  ;;  %1396 = vmatmul.mubr.msk.f32.gmra.mrb[40].mxu0 %vm766_vm2, %v742_v58 }
 0x1ea   : > { %1398 = vmatprep.mubr.msk.f32.mxu0 %vm1488_vm0, %v1489_v6 }
 0x1eb   : > { %v743_v62 = vmax.f32 %v694_v60, 0.0 }
 0x1ec   : > { %v698_v0 = vpop.f32.mrb[42].mxu1 }
 0x1ed   : > { %v699_v1 = vadd.f32 %v1800_v63, %v698_v0  ;;  %v1330_v2 = vpop.f32.mrb[43].mxu1  ;;  %1399 = vmatmul.mubr.msk.f32.gmra.mrb[42].mxu0 %vm766_vm2, %v743_v62 }
 0x1ee   : > { %1401 = vmatprep.mubr.msk.f32.mxu0 %vm1488_vm0, %v1489_v6 }
 0x1ef   : > { %v744_v4 = vmax.f32 %v699_v1, 0.0 }
 0x1f0   : > { %v703_v5 = vpop.f32.mrb[44].mxu1 }
 0x1f1   : > { %v704_v7 = vadd.f32 %v1800_v63, %v703_v5  ;;  %v1333_v8 = vpop.f32.mrb[45].mxu1  ;;  %1402 = vmatmul.mubr.msk.f32.gmra.mrb[44].mxu0 %vm766_vm2, %v744_v4 }
 0x1f2   : > { %1404 = vmatprep.mubr.msk.f32.mxu0 %vm1488_vm0, %v1489_v6 }
 0x1f3   : > { %v745_v9 = vmax.f32 %v704_v7, 0.0 }
 0x1f4   : > { %v708_v10 = vpop.f32.mrb[46].mxu1 }
 0x1f5   : > { %v709_v3 = vadd.f32 %v1800_v63, %v708_v10  ;;  %v1336_v11 = vpop.f32.mrb[47].mxu1  ;;  %1405 = vmatmul.mubr.msk.f32.gmra.mrb[46].mxu0 %vm766_vm2, %v745_v9 }
 0x1f6   : > { %1407 = vmatprep.mubr.msk.f32.mxu0 %vm1488_vm0, %v1489_v6 }
 0x1f7   : > { %v746_v12 = vmax.f32 %v709_v3, 0.0 }
 0x1f8   : > { %v713_v13 = vpop.f32.mrb[48].mxu1 }
 0x1f9   : > { %v714_v14 = vadd.f32 %v1800_v63, %v713_v13  ;;  %v1339_v15 = vpop.f32.mrb[49].mxu1  ;;  %1408 = vmatmul.mubr.msk.f32.gmra.mrb[48].mxu0 %vm766_vm2, %v746_v12 }
 0x1fa   : > { %1410 = vmatprep.mubr.msk.f32.mxu0 %vm1488_vm0, %v1489_v6 }
 0x1fb   : > { %v747_v16 = vmax.f32 %v714_v14, 0.0 }
 0x1fc   : > { %v718_v17 = vpop.f32.mrb[50].mxu1 }
 0x1fd   : > { %v719_v18 = vadd.f32 %v1800_v63, %v718_v17  ;;  %v1342_v19 = vpop.f32.mrb[51].mxu1  ;;  %1411 = vmatmul.mubr.msk.f32.gmra.mrb[50].mxu0 %vm766_vm2, %v747_v16 }
 0x1fe   : > { %1413 = vmatprep.mubr.msk.f32.mxu0 %vm1488_vm0, %v1489_v6 }
 0x1ff   : > { %v748_v20 = vmax.f32 %v719_v18, 0.0 }
 0x200   : > { %v723_v21 = vpop.f32.mrb[52].mxu1 }
 0x201   : > { %v724_v22 = vadd.f32 %v1800_v63, %v723_v21  ;;  %v1345_v23 = vpop.f32.mrb[53].mxu1  ;;  %1414 = vmatmul.mubr.msk.f32.gmra.mrb[52].mxu0 %vm766_vm2, %v748_v20 }
 0x202   : > { %1416 = vmatprep.mubr.msk.f32.mxu0 %vm1488_vm0, %v1489_v6 }
 0x203   : > { %v749_v24 = vmax.f32 %v724_v22, 0.0 }
 0x204   : > { %v728_v25 = vpop.f32.mrb[54].mxu1 }
 0x205   : > { %v729_v26 = vadd.f32 %v1800_v63, %v728_v25  ;;  %v1348_v27 = vpop.f32.mrb[55].mxu1  ;;  %1417 = vmatmul.mubr.msk.f32.gmra.mrb[54].mxu0 %vm766_vm2, %v749_v24 }
 0x206   : > { %1419 = vmatprep.mubr.msk.f32.mxu0 %vm1488_vm0, %v1489_v6 }
 0x207   : > { %v750_v28 = vmax.f32 %v729_v26, 0.0 }
 0x209   : > { %1420 = vmatmul.mubr.msk.f32.gmra.mrb[56].mxu0 %vm766_vm2, %v750_v28 }
 0x294   : > { %v890_v63 = vpop.f32.mrb[20].mxu0 }
 0x295   : > { %v891_v6 = vadd.f32 %v1879_v29, %v890_v63  ;;  %v1367_v30 = vpop.f32.mrb[21].mxu0 }
 0x297   : > { %985 = vst.msk [vmem:[%s1886_s10] sm:$0xff] %vm984_vm3, %v891_v6 }
 0x298   : > { %v895_v31 = vpop.f32.mrb[22].mxu0 }
 0x299   : > { %v896_v32 = vadd.f32 %v1879_v29, %v895_v31  ;;  %v1370_v33 = vpop.f32.mrb[23].mxu0 }
 0x29b   : > { %986 = vst.msk [vmem:[%s1886_s10 + $0x8] sm:$0xff] %vm984_vm3, %v896_v32 }
 0x29c   : > { %v900_v34 = vpop.f32.mrb[24].mxu0 }
 0x29d   : > { %v901_v35 = vadd.f32 %v1879_v29, %v900_v34  ;;  %v1373_v36 = vpop.f32.mrb[25].mxu0 }
 0x29f   : > { %987 = vst.msk [vmem:[%s1886_s10 + $0x10] sm:$0xff] %vm984_vm3, %v901_v35 }
 0x2a0   : > { %v905_v37 = vpop.f32.mrb[26].mxu0 }
 0x2a1   : > { %v906_v38 = vadd.f32 %v1879_v29, %v905_v37  ;;  %v1376_v39 = vpop.f32.mrb[27].mxu0 }
 0x2a3   : > { %988 = vst.msk [vmem:[%s1886_s10 + $0x18] sm:$0xff] %vm984_vm3, %v906_v38 }
 0x2a4   : > { %v910_v40 = vpop.f32.mrb[28].mxu0 }
 0x2a5   : > { %v911_v41 = vadd.f32 %v1879_v29, %v910_v40  ;;  %v1379_v42 = vpop.f32.mrb[29].mxu0 }
 0x2a7   : > { %989 = vst.msk [vmem:[%s1886_s10 + $0x20] sm:$0xff] %vm984_vm3, %v911_v41 }
 0x2a8   : > { %v915_v43 = vpop.f32.mrb[30].mxu0 }
 0x2a9   : > { %v916_v44 = vadd.f32 %v1879_v29, %v915_v43  ;;  %v1382_v45 = vpop.f32.mrb[31].mxu0 }
 0x2ab   : > { %990 = vst.msk [vmem:[%s1886_s10 + $0x28] sm:$0xff] %vm984_vm3, %v916_v44 }
 0x2ac   : > { %v920_v46 = vpop.f32.mrb[32].mxu0 }
 0x2ad   : > { %v921_v47 = vadd.f32 %v1879_v29, %v920_v46  ;;  %v1385_v48 = vpop.f32.mrb[33].mxu0 }
 0x2af   : > { %991 = vst.msk [vmem:[%s1886_s10 + $0x30] sm:$0xff] %vm984_vm3, %v921_v47 }
 0x2b0   : > { %v925_v49 = vpop.f32.mrb[34].mxu0 }
 0x2b1   : > { %v926_v50 = vadd.f32 %v1879_v29, %v925_v49  ;;  %v1388_v51 = vpop.f32.mrb[35].mxu0 }
 0x2b3   : > { %992 = vst.msk [vmem:[%s1886_s10 + $0x38] sm:$0xff] %vm984_vm3, %v926_v50 }
 0x2b4   : > { %v930_v52 = vpop.f32.mrb[36].mxu0 }
 0x2b5   : > { %v931_v53 = vadd.f32 %v1879_v29, %v930_v52  ;;  %v1391_v54 = vpop.f32.mrb[37].mxu0 }
 0x2b7   : > { %993 = vst.msk [vmem:[%s1886_s10 + $0x40] sm:$0xff] %vm984_vm3, %v931_v53 }
 0x2b8   : > { %v935_v55 = vpop.f32.mrb[38].mxu0 }
 0x2b9   : > { %v936_v56 = vadd.f32 %v1879_v29, %v935_v55  ;;  %v1394_v57 = vpop.f32.mrb[39].mxu0 }
 0x2bb   : > { %994 = vst.msk [vmem:[%s1886_s10 + $0x48] sm:$0xff] %vm984_vm3, %v936_v56 }
 0x2bc   : > { %v940_v58 = vpop.f32.mrb[40].mxu0 }
 0x2bd   : > { %v941_v59 = vadd.f32 %v1879_v29, %v940_v58  ;;  %v1397_v60 = vpop.f32.mrb[41].mxu0 }
 0x2bf   : > { %995 = vst.msk [vmem:[%s1886_s10 + $0x50] sm:$0xff] %vm984_vm3, %v941_v59 }
 0x2c0   : > { %v945_v61 = vpop.f32.mrb[42].mxu0 }
 0x2c1   : > { %v946_v62 = vadd.f32 %v1879_v29, %v945_v61  ;;  %v1400_v0 = vpop.f32.mrb[43].mxu0 }
 0x2c3   : > { %996 = vst.msk [vmem:[%s1886_s10 + $0x58] sm:$0xff] %vm984_vm3, %v946_v62 }
 0x2c4   : > { %v950_v1 = vpop.f32.mrb[44].mxu0 }
 0x2c5   : > { %v951_v2 = vadd.f32 %v1879_v29, %v950_v1  ;;  %v1403_v4 = vpop.f32.mrb[45].mxu0 }
 0x2c7   : > { %997 = vst.msk [vmem:[%s1886_s10 + $0x60] sm:$0xff] %vm984_vm3, %v951_v2 }
 0x2c8   : > { %v955_v5 = vpop.f32.mrb[46].mxu0 }
 0x2c9   : > { %v956_v7 = vadd.f32 %v1879_v29, %v955_v5  ;;  %v1406_v8 = vpop.f32.mrb[47].mxu0 }
 0x2cb   : > { %998 = vst.msk [vmem:[%s1886_s10 + $0x68] sm:$0xff] %vm984_vm3, %v956_v7 }
 0x2cc   : > { %v960_v9 = vpop.f32.mrb[48].mxu0 }
 0x2cd   : > { %v961_v10 = vadd.f32 %v1879_v29, %v960_v9  ;;  %v1409_v3 = vpop.f32.mrb[49].mxu0 }
 0x2cf   : > { %999 = vst.msk [vmem:[%s1886_s10 + $0x70] sm:$0xff] %vm984_vm3, %v961_v10 }
 0x2d0   : > { %v965_v11 = vpop.f32.mrb[50].mxu0 }
 0x2d1   : > { %v966_v12 = vadd.f32 %v1879_v29, %v965_v11  ;;  %v1412_v13 = vpop.f32.mrb[51].mxu0 }
 0x2d3   : > { %1000 = vst.msk [vmem:[%s1886_s10 + $0x78] sm:$0xff] %vm984_vm3, %v966_v12 }
 0x2d4   : > { %v970_v14 = vpop.f32.mrb[52].mxu0 }
 0x2d5   : > { %v971_v15 = vadd.f32 %v1879_v29, %v970_v14  ;;  %v1415_v16 = vpop.f32.mrb[53].mxu0 }
 0x2d7   : > { %1001 = vst.msk [vmem:[%s1886_s10 + $0x80] sm:$0xff] %vm984_vm3, %v971_v15 }
 0x2d8   : > { %v975_v17 = vpop.f32.mrb[54].mxu0 }
 0x2d9   : > { %v976_v18 = vadd.f32 %v1879_v29, %v975_v17  ;;  %v1418_v19 = vpop.f32.mrb[55].mxu0 }
 0x2db   : > { %1002 = vst.msk [vmem:[%s1886_s10 + $0x88] sm:$0xff] %vm984_vm3, %v976_v18 }
 0x2dc   : > { %v980_v20 = vpop.f32.mrb[56].mxu0 }
 0x2dd   : > { %v981_v21 = vadd.f32 %v1879_v29, %v980_v20  ;;  %v1421_v22 = vpop.f32.mrb[57].mxu0 }
 0x2df   : > { %1003 = vst.msk [vmem:[%s1886_s10 + $0x90] sm:$0xff] %vm984_vm3, %v981_v21 }
 0x2e0 PF: > { %s17_s24 = sadd.s32 1, %s1485_s24  }
 0x2e1   : > { %p14_p4 = scmp.ge.s32.totalorder %s17_s24, 4  }
 0x2e3   :  { %16 = sbr.rel (!%p14_p4) target bundleno = 1 (0x1), region = 78 }

</bundles_post_ra>
